<compile_context>
chip_gen: v7x
topology: tpu7x:2x2x1
jax: 0.10.0
libtpu: 0.0.40
codegen_flags: <defaults>
</compile_context>

<pallas_src>
import math

import jax
import jax.numpy as jnp
from jax.experimental import pallas as pl
from jax.experimental.pallas import tpu as pltpu


def _round_up(x, m):
    return ((x + m - 1) // m) * m


def _biaffine_kernel(xs_ref, xr_ref, wmain_ref, wones_ref, b_ref, o_ref, g_ref):
    # xs_ref   : (TN, Ds)        f32   sender features (VPU side only)
    # xr_ref   : (TN, Dr)        bf16  receiver features (MXU LHS)
    # wmain_ref: (Dr, (Ds+1)*O)  bf16  W[d, e<Dr, o] flattened as [e, d*O+o]
    # wones_ref: (1,  (Ds+1)*O)  f32   W[d, Dr, o]  (the x2 "ones" column)
    # b_ref    : (1, O)          f32
    # o_ref    : (TN, O)
    # g_ref    : (TN, (Ds+1)*O)  f32   VMEM scratch for the lane-dense interm.
    ds = xs_ref.shape[1]
    o = o_ref.shape[1]

    # Single lane-dense MXU matmul (K = Dr), f32 accumulation; the broadcast
    # add of the x2-ones row replaces the wrapper-side concatenate.
    g_ref[...] = (
        jnp.dot(xr_ref[...], wmain_ref[...], preferred_element_type=jnp.float32)
        + wones_ref[...]
    )

    xs = xs_ref[...].astype(jnp.float32)

    # Weighted reduction over the sender axis on the VPU.  d == Ds is the x1
    # "ones" row -> no multiply.  Ds is small, so a static unroll is fine.
    acc = g_ref[:, ds * o:(ds + 1) * o]
    for d in range(ds):
        acc = acc + g_ref[:, d * o:(d + 1) * o] * xs[:, d:d + 1]

    o_ref[...] = (acc + b_ref[...]).astype(o_ref.dtype)


def biaffine_message_passer(x_s, x_r, weight, bias, *, tn=256):
    """x_s: (B, N, sender_dim), x_r: (B, N, receiver_dim) -> (B, N, receiver_dim).

    tn: row tile (tune per generation; 256-512 for f32/bf16 inputs keeps the
    pipeline near roofline while leaving the row grid axis >= 2 on v7x).
    """
    B, N, Ds = x_s.shape
    _, _, Dr = x_r.shape
    D1, E1, O = weight.shape
    assert D1 == Ds + 1 and E1 == Dr + 1 and O == Dr

    total = B * N
    tn_eff = min(_round_up(tn, 8), _round_up(total, 8))
    padded = _round_up(total, tn_eff)

    xs2 = x_s.reshape(total, Ds).astype(jnp.float32)
    xr2 = x_r.reshape(total, Dr)
    if padded != total:
        pad = padded - total
        xs2 = jnp.pad(xs2, ((0, pad), (0, 0)))
        xr2 = jnp.pad(xr2, ((0, pad), (0, 0)))
    xr2 = xr2.astype(jnp.bfloat16)  # MXU-native; f32 accumulation in-kernel.

    # W[d, e, o] -> Wp[e, d*O + o]; split off the e == Dr (x2-ones) row so the
    # activations never get a ones column appended in HBM.
    wp = jnp.transpose(weight, (1, 0, 2)).reshape(E1, D1 * O)
    w_main = wp[:Dr].astype(jnp.bfloat16)          # (Dr, D1*O)  MXU RHS
    w_ones = wp[Dr:Dr + 1].astype(jnp.float32)     # (1,  D1*O)
    bias2d = bias.reshape(1, O).astype(jnp.float32)

    grid = (padded // tn_eff,)
    out = pl.pallas_call(
        _biaffine_kernel,
        out_shape=jax.ShapeDtypeStruct((padded, O), x_s.dtype),
        grid_spec=pltpu.PrefetchScalarGridSpec(
            num_scalar_prefetch=0,
            grid=grid,
            in_specs=[
                pl.BlockSpec((tn_eff, Ds), lambda i: (i, 0)),
                pl.BlockSpec((tn_eff, Dr), lambda i: (i, 0)),
                # Grid-invariant blocks (weight / ones-row / bias).
                pl.BlockSpec((Dr, D1 * O), lambda i: (0, 0)),
                pl.BlockSpec((1, D1 * O), lambda i: (0, 0)),
                pl.BlockSpec((1, O), lambda i: (0, 0)),
            ],
            out_specs=pl.BlockSpec((tn_eff, O), lambda i: (i, 0)),
            scratch_shapes=[pltpu.VMEM((tn_eff, D1 * O), jnp.float32)],
        ),
        compiler_params=pltpu.CompilerParams(
            dimension_semantics=("parallel",)),
    )(xs2, xr2, w_main, w_ones, bias2d)

    return out[:total].reshape(B, N, O)


def init_params(key, sender_dim, receiver_dim):
    """Deterministic xavier_normal_-style init matching BiafEncoder.reset_parameters."""
    D1, E1, O = sender_dim + 1, receiver_dim + 1, receiver_dim
    # torch xavier_normal_ on a 3-D tensor: fan_in = size(1)*rf, fan_out = size(0)*rf
    rf = O
    fan_in = E1 * rf
    fan_out = D1 * rf
    std = math.sqrt(2.0 / (fan_in + fan_out))
    weight = std * jax.random.normal(key, (D1, E1, O), dtype=jnp.float32)
    bias = jnp.zeros((O,), dtype=jnp.float32)
    return weight, bias


if __name__ == "__main__":
    sender_dim = 16
    receiver_dim = 32
    B, N = 2, 8

    key = jax.random.PRNGKey(0)
    kw, ks, kr = jax.random.split(key, 3)

    weight, bias = init_params(kw, sender_dim, receiver_dim)
    x_s = jax.random.normal(ks, (B, N, sender_dim), dtype=jnp.float32)
    x_r = jax.random.normal(kr, (B, N, receiver_dim), dtype=jnp.float32)

    out = biaffine_message_passer(x_s, x_r, weight, bias)
    out = jax.block_until_ready(out)
    assert out.shape == (B, N, receiver_dim)

    # Pure-JAX reference of the PyTorch forward (full f32).
    x1 = jnp.concatenate([x_s, jnp.ones_like(x_s[..., :1])], axis=-1)
    x2 = jnp.concatenate([x_r, jnp.ones_like(x_r[..., :1])], axis=-1)
    ref_f32 = jnp.einsum('bnd,bne,deo->bno', x1, x2, weight) + bias

    # Matched-precision reference (same bf16 rounding of the MXU operands as
    # the kernel, f32 accumulation) -> tight tolerance.
    xr_b = x_r.astype(jnp.bfloat16).astype(jnp.float32)
    w_main_b = weight[:, :receiver_dim, :].astype(jnp.bfloat16).astype(jnp.float32)
    ref_match = (jnp.einsum('bnd,bne,deo->bno', x1, xr_b, w_main_b)
                 + jnp.einsum('bnd,do->bno', x1, weight[:, receiver_dim, :])
                 + bias)

    assert jnp.allclose(out, ref_match, atol=1e-3, rtol=1e-3), \
        "mismatch vs matched-precision reference"
    assert jnp.allclose(out, ref_f32, atol=5e-2, rtol=5e-2), \
        "mismatch vs f32 reference"
    print("KERNEL_OK")
</pallas_src>

<mosaic_0001>
module attributes {stable_mosaic.version = 11 : i64} {
  func.func @_biaffine_kernel(%arg0: i32, %arg1: memref<16x16xf32, #tpu.memory_space<vmem>>, %arg2: memref<16x32xbf16, #tpu.memory_space<vmem>>, %arg3: memref<32x544xbf16, #tpu.memory_space<vmem>>, %arg4: memref<1x544xf32, #tpu.memory_space<vmem>>, %arg5: memref<1x32xf32, #tpu.memory_space<vmem>>, %arg6: memref<16x32xf32, #tpu.memory_space<vmem>>, %arg7: memref<16x544xf32, #tpu.memory_space<vmem>>) attributes {dimension_semantics = [#tpu.dimension_semantics<parallel>], iteration_bounds = array<i64: 1>, scalar_prefetch = 0 : i64, scratch_operands = 1 : i64, tpu.core_type = #tpu.core_type<tc>, window_params = [{transform_indices = @transform_0, window_bounds = array<i64: 16, 16>}, {transform_indices = @transform_1, window_bounds = array<i64: 16, 32>}, {pipeline_mode = #tpu.pipeline_mode<synchronous>, transform_indices = @transform_2, window_bounds = array<i64: 32, 544>}, {pipeline_mode = #tpu.pipeline_mode<synchronous>, transform_indices = @transform_3, window_bounds = array<i64: 1, 544>}, {pipeline_mode = #tpu.pipeline_mode<synchronous>, transform_indices = @transform_4, window_bounds = array<i64: 1, 32>}, {transform_indices = @transform_5, window_bounds = array<i64: 16, 32>}]} {
    %c0 = arith.constant 0 : index
    %c0_0 = arith.constant 0 : index
    %0 = vector.load %arg2[%c0, %c0_0] : memref<16x32xbf16, #tpu.memory_space<vmem>>, vector<16x32xbf16>
    %c0_1 = arith.constant 0 : index
    %c0_2 = arith.constant 0 : index
    %1 = vector.load %arg3[%c0_1, %c0_2] : memref<32x544xbf16, #tpu.memory_space<vmem>>, vector<32x544xbf16>
    %cst = arith.constant dense<0.000000e+00> : vector<16x544xf32>
    %2 = tpu.matmul %0, %1, %cst {dimension_numbers = #tpu.dot_dimension_numbers<[1], [0], [0], [1], [0, 0, 1, 1], [], []>} : vector<16x32xbf16>, vector<32x544xbf16>, vector<16x544xf32> -> vector<16x544xf32>
    %c0_3 = arith.constant 0 : index
    %c0_4 = arith.constant 0 : index
    %3 = vector.load %arg4[%c0_3, %c0_4] : memref<1x544xf32, #tpu.memory_space<vmem>>, vector<1x544xf32>
    %4 = vector.broadcast %3 : vector<1x544xf32> to vector<16x544xf32>
    %5 = arith.addf %2, %4 : vector<16x544xf32>
    %c0_5 = arith.constant 0 : index
    %c0_6 = arith.constant 0 : index
    %6 = vector.load %arg7[%c0_5, %c0_6] : memref<16x544xf32, #tpu.memory_space<vmem>>, vector<16x544xf32>
    tpu.vector_store %arg7[%c0_5, %c0_6], %5 {strides = array<i32>} : memref<16x544xf32, #tpu.memory_space<vmem>>, vector<16x544xf32>,
    %c0_7 = arith.constant 0 : index
    %c0_8 = arith.constant 0 : index
    %7 = vector.load %arg1[%c0_7, %c0_8] : memref<16x16xf32, #tpu.memory_space<vmem>>, vector<16x16xf32>
    %c0_9 = arith.constant 0 : index
    %c512 = arith.constant 512 : index
    %8 = vector.load %arg7[%c0_9, %c512] : memref<16x544xf32, #tpu.memory_space<vmem>>, vector<16x32xf32>
    %c0_10 = arith.constant 0 : index
    %c0_11 = arith.constant 0 : index
    %9 = vector.load %arg7[%c0_10, %c0_11] : memref<16x544xf32, #tpu.memory_space<vmem>>, vector<16x32xf32>
    %10 = vector.extract_strided_slice %7 {offsets = [0, 0], sizes = [16, 1], strides = [1, 1]} : vector<16x16xf32> to vector<16x1xf32>
    %11 = vector.broadcast %10 : vector<16x1xf32> to vector<16x32xf32>
    %12 = arith.mulf %9, %11 : vector<16x32xf32>
    %13 = arith.addf %8, %12 : vector<16x32xf32>
    %c0_12 = arith.constant 0 : index
    %c32 = arith.constant 32 : index
    %14 = vector.load %arg7[%c0_12, %c32] : memref<16x544xf32, #tpu.memory_space<vmem>>, vector<16x32xf32>
    %15 = vector.extract_strided_slice %7 {offsets = [0, 1], sizes = [16, 1], strides = [1, 1]} : vector<16x16xf32> to vector<16x1xf32>
    %16 = vector.broadcast %15 : vector<16x1xf32> to vector<16x32xf32>
    %17 = arith.mulf %14, %16 : vector<16x32xf32>
    %18 = arith.addf %13, %17 : vector<16x32xf32>
    %c0_13 = arith.constant 0 : index
    %c64 = arith.constant 64 : index
    %19 = vector.load %arg7[%c0_13, %c64] : memref<16x544xf32, #tpu.memory_space<vmem>>, vector<16x32xf32>
    %20 = vector.extract_strided_slice %7 {offsets = [0, 2], sizes = [16, 1], strides = [1, 1]} : vector<16x16xf32> to vector<16x1xf32>
    %21 = vector.broadcast %20 : vector<16x1xf32> to vector<16x32xf32>
    %22 = arith.mulf %19, %21 : vector<16x32xf32>
    %23 = arith.addf %18, %22 : vector<16x32xf32>
    %c0_14 = arith.constant 0 : index
    %c96 = arith.constant 96 : index
    %24 = vector.load %arg7[%c0_14, %c96] : memref<16x544xf32, #tpu.memory_space<vmem>>, vector<16x32xf32>
    %25 = vector.extract_strided_slice %7 {offsets = [0, 3], sizes = [16, 1], strides = [1, 1]} : vector<16x16xf32> to vector<16x1xf32>
    %26 = vector.broadcast %25 : vector<16x1xf32> to vector<16x32xf32>
    %27 = arith.mulf %24, %26 : vector<16x32xf32>
    %28 = arith.addf %23, %27 : vector<16x32xf32>
    %c0_15 = arith.constant 0 : index
    %c128 = arith.constant 128 : index
    %29 = vector.load %arg7[%c0_15, %c128] : memref<16x544xf32, #tpu.memory_space<vmem>>, vector<16x32xf32>
    %30 = vector.extract_strided_slice %7 {offsets = [0, 4], sizes = [16, 1], strides = [1, 1]} : vector<16x16xf32> to vector<16x1xf32>
    %31 = vector.broadcast %30 : vector<16x1xf32> to vector<16x32xf32>
    %32 = arith.mulf %29, %31 : vector<16x32xf32>
    %33 = arith.addf %28, %32 : vector<16x32xf32>
    %c0_16 = arith.constant 0 : index
    %c160 = arith.constant 160 : index
    %34 = vector.load %arg7[%c0_16, %c160] : memref<16x544xf32, #tpu.memory_space<vmem>>, vector<16x32xf32>
    %35 = vector.extract_strided_slice %7 {offsets = [0, 5], sizes = [16, 1], strides = [1, 1]} : vector<16x16xf32> to vector<16x1xf32>
    %36 = vector.broadcast %35 : vector<16x1xf32> to vector<16x32xf32>
    %37 = arith.mulf %34, %36 : vector<16x32xf32>
    %38 = arith.addf %33, %37 : vector<16x32xf32>
    %c0_17 = arith.constant 0 : index
    %c192 = arith.constant 192 : index
    %39 = vector.load %arg7[%c0_17, %c192] : memref<16x544xf32, #tpu.memory_space<vmem>>, vector<16x32xf32>
    %40 = vector.extract_strided_slice %7 {offsets = [0, 6], sizes = [16, 1], strides = [1, 1]} : vector<16x16xf32> to vector<16x1xf32>
    %41 = vector.broadcast %40 : vector<16x1xf32> to vector<16x32xf32>
    %42 = arith.mulf %39, %41 : vector<16x32xf32>
    %43 = arith.addf %38, %42 : vector<16x32xf32>
    %c0_18 = arith.constant 0 : index
    %c224 = arith.constant 224 : index
    %44 = vector.load %arg7[%c0_18, %c224] : memref<16x544xf32, #tpu.memory_space<vmem>>, vector<16x32xf32>
    %45 = vector.extract_strided_slice %7 {offsets = [0, 7], sizes = [16, 1], strides = [1, 1]} : vector<16x16xf32> to vector<16x1xf32>
    %46 = vector.broadcast %45 : vector<16x1xf32> to vector<16x32xf32>
    %47 = arith.mulf %44, %46 : vector<16x32xf32>
    %48 = arith.addf %43, %47 : vector<16x32xf32>
    %c0_19 = arith.constant 0 : index
    %c256 = arith.constant 256 : index
    %49 = vector.load %arg7[%c0_19, %c256] : memref<16x544xf32, #tpu.memory_space<vmem>>, vector<16x32xf32>
    %50 = vector.extract_strided_slice %7 {offsets = [0, 8], sizes = [16, 1], strides = [1, 1]} : vector<16x16xf32> to vector<16x1xf32>
    %51 = vector.broadcast %50 : vector<16x1xf32> to vector<16x32xf32>
    %52 = arith.mulf %49, %51 : vector<16x32xf32>
    %53 = arith.addf %48, %52 : vector<16x32xf32>
    %c0_20 = arith.constant 0 : index
    %c288 = arith.constant 288 : index
    %54 = vector.load %arg7[%c0_20, %c288] : memref<16x544xf32, #tpu.memory_space<vmem>>, vector<16x32xf32>
    %55 = vector.extract_strided_slice %7 {offsets = [0, 9], sizes = [16, 1], strides = [1, 1]} : vector<16x16xf32> to vector<16x1xf32>
    %56 = vector.broadcast %55 : vector<16x1xf32> to vector<16x32xf32>
    %57 = arith.mulf %54, %56 : vector<16x32xf32>
    %58 = arith.addf %53, %57 : vector<16x32xf32>
    %c0_21 = arith.constant 0 : index
    %c320 = arith.constant 320 : index
    %59 = vector.load %arg7[%c0_21, %c320] : memref<16x544xf32, #tpu.memory_space<vmem>>, vector<16x32xf32>
    %60 = vector.extract_strided_slice %7 {offsets = [0, 10], sizes = [16, 1], strides = [1, 1]} : vector<16x16xf32> to vector<16x1xf32>
    %61 = vector.broadcast %60 : vector<16x1xf32> to vector<16x32xf32>
    %62 = arith.mulf %59, %61 : vector<16x32xf32>
    %63 = arith.addf %58, %62 : vector<16x32xf32>
    %c0_22 = arith.constant 0 : index
    %c352 = arith.constant 352 : index
    %64 = vector.load %arg7[%c0_22, %c352] : memref<16x544xf32, #tpu.memory_space<vmem>>, vector<16x32xf32>
    %65 = vector.extract_strided_slice %7 {offsets = [0, 11], sizes = [16, 1], strides = [1, 1]} : vector<16x16xf32> to vector<16x1xf32>
    %66 = vector.broadcast %65 : vector<16x1xf32> to vector<16x32xf32>
    %67 = arith.mulf %64, %66 : vector<16x32xf32>
    %68 = arith.addf %63, %67 : vector<16x32xf32>
    %c0_23 = arith.constant 0 : index
    %c384 = arith.constant 384 : index
    %69 = vector.load %arg7[%c0_23, %c384] : memref<16x544xf32, #tpu.memory_space<vmem>>, vector<16x32xf32>
    %70 = vector.extract_strided_slice %7 {offsets = [0, 12], sizes = [16, 1], strides = [1, 1]} : vector<16x16xf32> to vector<16x1xf32>
    %71 = vector.broadcast %70 : vector<16x1xf32> to vector<16x32xf32>
    %72 = arith.mulf %69, %71 : vector<16x32xf32>
    %73 = arith.addf %68, %72 : vector<16x32xf32>
    %c0_24 = arith.constant 0 : index
    %c416 = arith.constant 416 : index
    %74 = vector.load %arg7[%c0_24, %c416] : memref<16x544xf32, #tpu.memory_space<vmem>>, vector<16x32xf32>
    %75 = vector.extract_strided_slice %7 {offsets = [0, 13], sizes = [16, 1], strides = [1, 1]} : vector<16x16xf32> to vector<16x1xf32>
    %76 = vector.broadcast %75 : vector<16x1xf32> to vector<16x32xf32>
    %77 = arith.mulf %74, %76 : vector<16x32xf32>
    %78 = arith.addf %73, %77 : vector<16x32xf32>
    %c0_25 = arith.constant 0 : index
    %c448 = arith.constant 448 : index
    %79 = vector.load %arg7[%c0_25, %c448] : memref<16x544xf32, #tpu.memory_space<vmem>>, vector<16x32xf32>
    %80 = vector.extract_strided_slice %7 {offsets = [0, 14], sizes = [16, 1], strides = [1, 1]} : vector<16x16xf32> to vector<16x1xf32>
    %81 = vector.broadcast %80 : vector<16x1xf32> to vector<16x32xf32>
    %82 = arith.mulf %79, %81 : vector<16x32xf32>
    %83 = arith.addf %78, %82 : vector<16x32xf32>
    %c0_26 = arith.constant 0 : index
    %c480 = arith.constant 480 : index
    %84 = vector.load %arg7[%c0_26, %c480] : memref<16x544xf32, #tpu.memory_space<vmem>>, vector<16x32xf32>
    %85 = vector.extract_strided_slice %7 {offsets = [0, 15], sizes = [16, 1], strides = [1, 1]} : vector<16x16xf32> to vector<16x1xf32>
    %86 = vector.broadcast %85 : vector<16x1xf32> to vector<16x32xf32>
    %87 = arith.mulf %84, %86 : vector<16x32xf32>
    %88 = arith.addf %83, %87 : vector<16x32xf32>
    %c0_27 = arith.constant 0 : index
    %c0_28 = arith.constant 0 : index
    %89 = vector.load %arg5[%c0_27, %c0_28] : memref<1x32xf32, #tpu.memory_space<vmem>>, vector<1x32xf32>
    %90 = vector.broadcast %89 : vector<1x32xf32> to vector<16x32xf32>
    %91 = arith.addf %88, %90 : vector<16x32xf32>
    %c0_29 = arith.constant 0 : index
    %c0_30 = arith.constant 0 : index
    %92 = vector.load %arg6[%c0_29, %c0_30] : memref<16x32xf32, #tpu.memory_space<vmem>>, vector<16x32xf32>
    tpu.vector_store %arg6[%c0_29, %c0_30], %91 {strides = array<i32>} : memref<16x32xf32, #tpu.memory_space<vmem>>, vector<16x32xf32>,
    return
  }
  func.func @transform_0(%arg0: i32) -> (i32, i32) {
    %c0_i32 = arith.constant 0 : i32
    %c0_i32_0 = arith.constant 0 : i32
    return %arg0, %c0_i32 : i32, i32
  }
  func.func @transform_1(%arg0: i32) -> (i32, i32) {
    %c0_i32 = arith.constant 0 : i32
    %c0_i32_0 = arith.constant 0 : i32
    return %arg0, %c0_i32 : i32, i32
  }
  func.func @transform_2(%arg0: i32) -> (i32, i32) {
    %c0_i32 = arith.constant 0 : i32
    %c0_i32_0 = arith.constant 0 : i32
    %c0_i32_1 = arith.constant 0 : i32
    return %c0_i32, %c0_i32_0 : i32, i32
  }
  func.func @transform_3(%arg0: i32) -> (i32, i32) {
    %c0_i32 = arith.constant 0 : i32
    %c0_i32_0 = arith.constant 0 : i32
    %c0_i32_1 = arith.constant 0 : i32
    return %c0_i32, %c0_i32_0 : i32, i32
  }
  func.func @transform_4(%arg0: i32) -> (i32, i32) {
    %c0_i32 = arith.constant 0 : i32
    %c0_i32_0 = arith.constant 0 : i32
    %c0_i32_1 = arith.constant 0 : i32
    return %c0_i32, %c0_i32_0 : i32, i32
  }
  func.func @transform_5(%arg0: i32) -> (i32, i32) {
    %c0_i32 = arith.constant 0 : i32
    %c0_i32_0 = arith.constant 0 : i32
    return %arg0, %c0_i32 : i32, i32
  }
}

</mosaic_0001>

<bundles_post_ra>
// kernel: tpu_custom_call.1
= control target key start
LH: loop header
LB: loop body
LE: loop exit
PB: predicated region body
PF: predicated region fallthrough
CT: control target
= control target key end

     0   :  { %10 = vsyncpa [#allocation4], 0  ;;  %s1083_s0 = inlined_call_operand.hbm [shape: f32[16,16], index: 0, kind: input, shape index: {}]   ;;  %s1084_s1 = inlined_call_operand.hbm [shape: bf16[16,32], index: 1, kind: input, shape index: {}]   ;;  %s1085_s2 = inlined_call_operand.hbm [shape: bf16[32,544], index: 2, kind: input, shape index: {}]   ;;  %s1086_s3 = inlined_call_operand.vmem [shape: f32[1,544], index: 3, kind: input, shape index: {}]   ;;  %s1087_s4 = inlined_call_operand.vmem [shape: f32[1,32], index: 4, kind: input, shape index: {}]   ;;  %s1088_s5 = inlined_call_operand.hbm [shape: f32[16,32], index: 5, kind: output, shape index: {}]  }
   0x1   :  { %11 = vsyncpa [#allocation7], 0 }
   0x2   :  { %12 = vsyncpa [#allocation5], 0  ;;  %s825_s18 = smov [#allocation6]   ;;  %s731_s22 = scalar_lea.hbm %s1084_s1, 128 }
   0x3   :  { %s30_s19 = sshll.u32 %s825_s18, 4  ;;  %p732_p0 = scmp.ne.s32.totalorder %s1084_s1, %s731_s22  ;;  %s31_s19 = int_to_ptr.vmem [resolvable:$true] %s30_s19 }
   0x4   :  { %p735_p1 = scmp.lt.u32.totalorder %s731_s22, %s1084_s1 }
   0x6   :  { %p737_p2 = pnand %p735_p1, %p732_p0 }
   0x8   :  { %740 = shalt.err (!%p737_p2)
}
   0x9   :  { %s741_s27 = scalar_lea.vmem %s31_s19, 128  ;;  %p746_p4 = scmp.lt.s32.totalorder %s31_s19, %s31_s19 }
   0xa   :  { %p742_p3 = scmp.ne.s32.totalorder %s31_s19, %s741_s27  ;;  %p747_p5 = scmp.lt.s32.totalorder %s741_s27, %s741_s27 }
   0xc   :  { %p748_p6 = por %p747_p5, %p746_p4 }
   0xe   :  { %p749_p7 = pnand %p748_p6, %p742_p3 }
  0x10   :  { %752 = shalt.err (!%p749_p7)
}
  0x11   :  { %s826_s28 = smov 64   ;;  %s827_s29 = smov 4  }
  0x12   :  { %36 = dma.hbm_to_vmem [thread:$0]  %s1084_s1, 128, %s31_s19, [#allocation7], %s826_s28, %s826_s28, %s827_s29  }
  0x13   :  { %s828_s7 = smov [#allocation3]   ;;  %s753_s11 = scalar_lea.hbm %s1083_s0, 256 }
  0x14   :  { %s18_s8 = sshll.u32 %s828_s7, 4  ;;  %p754_p8 = scmp.ne.s32.totalorder %s1083_s0, %s753_s11  ;;  %s19_s8 = int_to_ptr.vmem [resolvable:$true] %s18_s8 }
  0x15   :  { %p757_p9 = scmp.lt.u32.totalorder %s753_s11, %s1083_s0 }
  0x17   :  { %p759_p10 = pnand %p757_p9, %p754_p8 }
  0x19   :  { %762 = shalt.err (!%p759_p10)
}
  0x1a   :  { %s763_s16 = scalar_lea.vmem %s19_s8, 256  ;;  %p768_p12 = scmp.lt.s32.totalorder %s19_s8, %s19_s8 }
  0x1b   :  { %p764_p11 = scmp.ne.s32.totalorder %s19_s8, %s763_s16  ;;  %p769_p13 = scmp.lt.s32.totalorder %s763_s16, %s763_s16 }
  0x1d   :  { %p770_p0 = por %p769_p13, %p768_p12 }
  0x1f   :  { %p771_p1 = pnand %p770_p0, %p764_p11 }
  0x21   :  { %774 = shalt.err (!%p771_p1)
}
  0x22   :  { %s829_s1 = smov 128   ;;  %s830_s17 = smov 8  }
  0x23   :  { %24 = dma.hbm_to_vmem [thread:$0]  %s1083_s0, 256, %s19_s8, [#allocation4], %s829_s1, %s829_s1, %s830_s17  }
  0x24   :  { %s831_s20 = smov [#allocation8]   ;;  %s775_s24 = scalar_lea.hbm %s1085_s2, 1280 }
  0x25   :  { %s42_s21 = sshll.u32 %s831_s20, 4  ;;  %p776_p2 = scmp.ne.s32.totalorder %s1085_s2, %s775_s24  ;;  %s43_s21 = int_to_ptr.vmem [resolvable:$true] %s42_s21 }
  0x26   :  { %p779_p3 = scmp.lt.u32.totalorder %s775_s24, %s1085_s2 }
  0x28   :  { %p781_p4 = pnand %p779_p3, %p776_p2 }
  0x2a   :  { %784 = shalt.err (!%p781_p4)
}
  0x2b   :  { %s785_s30 = scalar_lea.vmem %s43_s21, 1280  ;;  %p790_p6 = scmp.lt.s32.totalorder %s43_s21, %s43_s21 }
  0x2c   :  { %p786_p5 = scmp.ne.s32.totalorder %s43_s21, %s785_s30  ;;  %p791_p7 = scmp.lt.s32.totalorder %s785_s30, %s785_s30 }
  0x2e   :  { %p792_p8 = por %p791_p7, %p790_p6 }
  0x30   :  { %p793_p9 = pnand %p792_p8, %p786_p5 }
  0x32   :  { %796 = shalt.err (!%p793_p9)
}
  0x33   :  { %s832_s0 = smov 320   ;;  %s833_s6 = smov 20  }
  0x34   :  { %48 = dma.hbm_to_vmem [thread:$0]  %s1085_s2, 1280, %s43_s21, [#allocation7], %s832_s0, %s832_s0, %s833_s6  }
  0x35   :  { %819 = dma.done.wait [#allocation4], 256  }
  0x36   :  { %820 = vsyncadd [#allocation4], 4294967040 }
  0x37   :  { %821 = dma.done.wait [#allocation7], 1408  }
  0x38   :  { %822 = vsyncadd [#allocation7], 4294965888  ;;  %v834_v0 = vmov 0   ;;  %v835_v1 = vmov 1   ;;  %v716_v2 = vld [vmem:[#allocation8 + $0x4] ss:$20 sps:$4 sm:$0xff]   ;;  %v79_v38 = vlaneseq }
  0x39   :  { %197 = vmatprep.mubr.bf16.mxu0 %v834_v0  ;;  %240 = vmatprep.mubr.bf16.mxu1 %v834_v0  ;;  %v718_v3 = vld [vmem:[#allocation8 + $0xc] ss:$20 sps:$4 sm:$0xff]   ;;  %v721_v5 = vld [vmem:[#allocation8 + $0x8] ss:$20 sps:$4 sm:$0xff]   ;;  %v727_v9 = vld [vmem:[#allocation8 + $0x30] ss:$20 sps:$4 sm:$0xff]  }
  0x3a   :  { %690 = vset.pattern.permute.xlu1 %v835_v1  ;;  %689 = vset.pattern.permute.xlu0 %v834_v0  ;;  %v720_v4 = vld [vmem:[#allocation8] ss:$20 sps:$4 sm:$0xff]   ;;  %v726_v8 = vld [vmem:[#allocation8 + $0x28] ss:$20 sps:$4 sm:$0xff]   ;;  %vm161_vm0 = vcmask 261120   ;;  %v836_v13 = vmov 0.0  }
  0x3b   :  { %165 = vmatprep.subr.bf16.mxu0 %v716_v2  ;;  %208 = vmatprep.subr.bf16.mxu1 %v718_v3  ;;  %v722_v6 = vld [vmem:[#allocation8 + $0x2c] ss:$20 sps:$4 sm:$0xff]   ;;  %v724_v7 = vld [vmem:[#allocation8 + $0x34] ss:$20 sps:$4 sm:$0xff]   ;;  %v728_v10 = vld [vmem:[#allocation6] sm:$0xff]   ;;  %vm837_vm1 = vmmov 0  }
  0x3c   :  { %166 = vmatpush1.bf16.msra.mxu0 %v720_v4  ;;  %209 = vmatpush1.bf16.msra.mxu1 %v721_v5  ;;  %v926_v11 = vld [vmem:[#allocation3] sm:$0xff]  ;;  %v729_v12 = vld [vmem:[#allocation8 + $0x10] ss:$20 sps:$4 sm:$0xff]   ;;  %v838_v16 = vmov 2   ;;  %v839_v17 = vmov 3   ;;  %v840_v18 = vmov 5  }
  0x3d   :  { %167 = vmatprep.subr.bf16.mxu0 %v722_v6  ;;  %210 = vmatprep.subr.bf16.mxu1 %v724_v7  ;;  %v929_v14 = vld [vmem:[#allocation3 + $0x8] sm:$0xff]  ;;  %v730_v15 = vld [vmem:[#allocation8 + $0x38] ss:$20 sps:$4 sm:$0xff]   ;;  %v841_v19 = vmov 6   ;;  %v842_v20 = vmov 7   ;;  %v843_v21 = vmov 10  }
  0x3e   :  { %323 = vperm.xlu1 %690, %v926_v11   ;;  %310 = vperm.xlu0 %689, %v926_v11   ;;  %v844_v22 = vmov 11   ;;  %v845_v23 = vmov 9   ;;  %v846_v24 = vmov 14   ;;  %v847_v25 = vmov 15   ;;  %v77_v46 = vld [vmem:[%s1086_s3] sm:$0x1f] }
  0x3f   :  { %v848_v26 = vmov 8   ;;  %v849_v27 = vmov 12   ;;  %v850_v28 = vmov 13   ;;  %v851_v29 = vmov 4   ;;  %s852_s3 = smov 96   ;;  %s853_s10 = smov 32  }
  0x40   :  { %168 = vmatpush1.bf16.msra.mxu0 %v726_v8  ;;  %211 = vmatpush1.bf16.msra.mxu1 %v727_v9  ;;  %v80_v41 = vshrl.u32 %v79_v38, 7  ;;  %s854_s12 = smov [#allocation9]  }
  0x41   :  { %651 = vmatprep.subr.bf16.mxu0 %v836_v13  ;;  %s620_s13 = sshll.u32 %s854_s12, 4  ;;  %s621_s13 = int_to_ptr.vmem [resolvable:$true] %s620_s13 }
  0x42   :  { %327 = vperm.xlu1 %690, %v929_v14   ;;  %315 = vperm.xlu0 %689, %v929_v14   ;;  %v81_v44 = vsub.s32 0, %v80_v41  ;;  %v89_v45 = vsub.s32 2, %v80_v41  ;;  %v85_v47 = vsub.s32 1, %v80_v41  ;;  %v93_v48 = vsub.s32 3, %v80_v41  ;;  %s797_s14 = scalar_lea.vmem %s621_s13, 256  ;;  %p802_p11 = scmp.lt.s32.totalorder %s621_s13, %s621_s13 }
  0x43   :  { %644 = vmatmul.mubr.msk.bf16.vlgmr.msra.gmra.mrb[0].mxu0 %vm161_vm0, %v728_v10  ;;  %645 = vmatmul.mubr.msk.bf16.vlgmr.msra.gmra.mrb[0].mxu1 %vm161_vm0, %v728_v10  ;;  %v97_v61 = vsub.s32 4, %v80_v41  ;;  %p798_p10 = scmp.ne.s32.totalorder %s621_s13, %s797_s14  ;;  %p803_p12 = scmp.lt.s32.totalorder %s797_s14, %s797_s14 }
  0x44   :  { %652 = vmatpush3.bf16.msra.mxu0 %v729_v12  ;;  %655 = vmatprep.mubr.msk.bf16.mxu0 %vm837_vm1, %v836_v13  ;;  %v82_v49 = vrot.slane %v77_v46, %v81_v44  ;;  %v90_v50 = vrot.slane %v77_v46, %v89_v45  ;;  %v86_v51 = vrot.slane %v77_v46, %v85_v47 }
  0x45   :  { %653 = vmatprep.subr.bf16.mxu0 %v836_v13  ;;  %v94_v52 = vrot.slane %v77_v46, %v93_v48  ;;  %p804_p13 = por %p803_p12, %p802_p11 }
  0x46   :  { %692 = vset.pattern.permute.xlu1 %v838_v16  ;;  %691 = vset.pattern.permute.xlu0 %v838_v16 }
  0x47   :  { %347 = vperm.xlu1 %692, %v929_v14   ;;  %343 = vperm.xlu0 %691, %v926_v11   ;;  %p805_p0 = pnand %p804_p13, %p798_p10 }
  0x48   :  { %654 = vmatpush3.bf16.msra.mxu0 %v730_v15 }
  0x4b   :  { %656 = vmatmul.mubr.msk.bf16.vlgmr.msra.gmra.mrb[4].mxu0 %vm161_vm0, %v728_v10  ;;  %693 = vset.pattern.permute.xlu1 %v839_v17  ;;  %v98_v10 = vrot.slane %v77_v46, %v97_v61 }
  0x4c   :  { %363 = vperm.xlu1 %693, %v926_v11   ;;  %694 = vset.pattern.permute.xlu0 %v839_v17 }
  0x4d   :  { %367 = vperm.xlu0 %694, %v929_v14  }
  0x50   :  { %695 = vset.pattern.permute.xlu1 %v840_v18 }
  0x51   :  { %397 = vperm.xlu1 %695, %v926_v11   ;;  %696 = vset.pattern.permute.xlu0 %v841_v19 }
  0x52   :  { %417 = vperm.xlu0 %696, %v926_v11  }
  0x55   :  { %401 = vperm.xlu1 %695, %v929_v14  }
  0x56   :  { %699 = vset.pattern.permute.xlu0 %v842_v20 }
  0x57   :  { %441 = vperm.xlu0 %699, %v929_v14  }
  0x59   :  { %697 = vset.pattern.permute.xlu1 %v841_v19 }
  0x5a   :  { %421 = vperm.xlu1 %697, %v929_v14  }
  0x5b   :  { %701 = vset.pattern.permute.xlu0 %v843_v21 }
  0x5c   :  { %491 = vperm.xlu0 %701, %v926_v11  }
  0x5e   :  { %698 = vset.pattern.permute.xlu1 %v842_v20 }
  0x5f   :  { %437 = vperm.xlu1 %698, %v926_v11  }
  0x60   :  { %704 = vset.pattern.permute.xlu0 %v844_v22 }
  0x61   :  { %515 = vperm.xlu0 %704, %v929_v14  }
  0x63   :  { %700 = vset.pattern.permute.xlu1 %v845_v23 }
  0x64   :  { %471 = vperm.xlu1 %700, %v926_v11  }
  0x65   :  { %706 = vset.pattern.permute.xlu0 %v846_v24 }
  0x66   :  { %565 = vperm.xlu0 %706, %v926_v11  }
  0x68   :  { %475 = vperm.xlu1 %700, %v929_v14  }
  0x6a   :  { %709 = vset.pattern.permute.xlu0 %v847_v25 }
  0x6b   :  { %589 = vperm.xlu0 %709, %v929_v14  }
  0x6c   :  { %702 = vset.pattern.permute.xlu1 %v843_v21 }
  0x6d   :  { %495 = vperm.xlu1 %702, %v929_v14  }
  0x6f   :  { %711 = vset.pattern.permute.xlu0 %v848_v26 }
  0x70   :  { %459 = vperm.xlu0 %711, %v926_v11  }
  0x71   :  { %703 = vset.pattern.permute.xlu1 %v844_v22 }
  0x72   :  { %511 = vperm.xlu1 %703, %v926_v11  }
  0x74   :  { %714 = vset.pattern.permute.xlu0 %v849_v27 }
  0x75   :  { %537 = vperm.xlu0 %714, %v929_v14  }
  0x76   :  { %705 = vset.pattern.permute.xlu1 %v850_v28 }
  0x77   :  { %545 = vperm.xlu1 %705, %v926_v11  }
  0x79   :  { %715 = vset.pattern.permute.xlu0 %v847_v25 }
  0x7b   :  { %549 = vperm.xlu1 %705, %v929_v14  }
  0x7f   :  { %707 = vset.pattern.permute.xlu1 %v846_v24 }
  0x80   :  { %569 = vperm.xlu1 %707, %v929_v14  }
  0x84   :  { %708 = vset.pattern.permute.xlu1 %v847_v25 }
  0x85   :  { %585 = vperm.xlu1 %708, %v926_v11  }
  0x89   :  { %710 = vset.pattern.permute.xlu1 %v851_v29 }
  0x8a   :  { %385 = vperm.xlu1 %710, %v926_v11  }
  0x8e   :  { %389 = vperm.xlu1 %710, %v929_v14  }
  0x92   :  { %712 = vset.pattern.permute.xlu1 %v848_v26 }
  0x93   :  { %463 = vperm.xlu1 %712, %v929_v14  }
  0x97   :  { %713 = vset.pattern.permute.xlu1 %v849_v27 }
  0x98   :  { %533 = vperm.xlu1 %713, %v926_v11  }
  0xbd   :  { %v324_v30 = vpop.permute.xlu1 %323  ;;  %v969_v35 = vpop.permute.xlu0 %310 }
  0xc1   :  { %v965_v31 = vpop.permute.xlu1 %327  ;;  %v973_v37 = vpop.permute.xlu0 %315 }
  0xc6   :  { %v967_v32 = vpop.permute.xlu1 %347  ;;  %v344_v40 = vpop.permute.xlu0 %343 }
  0xcb   :  { %v364_v33 = vpop.permute.xlu1 %363 }
  0xcc   :  { %v977_v43 = vpop.permute.xlu0 %367 }
  0xd0   :  { %v398_v34 = vpop.permute.xlu1 %397 }
  0xd1   :  { %v418_v54 = vpop.permute.xlu0 %417 }
  0xd4   :  { %v971_v36 = vpop.permute.xlu1 %401 }
  0xd6   :  { %v442_v15 = vpop.permute.xlu0 %441 }
  0xd9   :  { %v975_v39 = vpop.permute.xlu1 %421 }
  0xdb   :  { %v492_v24 = vpop.permute.xlu0 %491 }
  0xde   :  { %v438_v42 = vpop.permute.xlu1 %437 }
  0xe3   :  { %v472_v53 = vpop.permute.xlu1 %471 }
  0xe7   :  { %v476_v11 = vpop.permute.xlu1 %475 }
  0xec   :  { %v496_v23 = vpop.permute.xlu1 %495 }
  0xf1   :  { %v512_v27 = vpop.permute.xlu1 %511 }
 0x116   :  { %v199_v55 = vpop.f32.mrb[0].mxu0  ;;  %v242_v56 = vpop.f32.mrb[0].mxu1 }
 0x117   :  { %v982_v57 = vadd.f32 %v199_v55, %v82_v49  ;;  %v984_v58 = vadd.f32 %v242_v56, %v90_v50  ;;  %v201_v59 = vpop.f32.mrb[1].mxu0  ;;  %v244_v60 = vpop.f32.mrb[1].mxu1 }
 0x118   :  { %v986_v62 = vadd.f32 %v201_v59, %v86_v51  ;;  %v988_v63 = vadd.f32 %v244_v60, %v94_v52  ;;  %v203_v0 = vpop.f32.mrb[2].mxu0  ;;  %v246_v1 = vpop.f32.mrb[2].mxu1 }
 0x119   :  { %v990_v2 = vadd.f32 %v203_v0, %v82_v49  ;;  %v992_v3 = vadd.f32 %v246_v1, %v90_v50  ;;  %v205_v4 = vpop.f32.mrb[3].mxu0  ;;  %v248_v5 = vpop.f32.mrb[3].mxu1  ;;  %v478_v6 = vmul.f32 %v472_v53, %v984_v58  ;;  %v330_v9 = vmul.f32 %v324_v30, %v982_v57 }
 0x11a   :  { %v995_v7 = vadd.f32 %v205_v4, %v86_v51  ;;  %v997_v8 = vadd.f32 %v248_v5, %v94_v52  ;;  %v404_v12 = vmul.f32 %v398_v34, %v986_v62  ;;  %v350_v14 = vmul.f32 %v344_v40, %v982_v57  ;;  %v546_v34 = vpop.permute.xlu1 %545 }
 0x11b   :  { %482 = vrot.lane.b32.xlu1 %v478_v6, %s852_s3  ;;  %334 = vrot.lane.b32.xlu0 %v330_v9, %s852_s3  ;;  %v424_v20 = vmul.f32 %v418_v54, %v986_v62  ;;  %v370_v22 = vmul.f32 %v364_v33, %v982_v57  ;;  %v444_v25 = vmul.f32 %v438_v42, %v986_v62 }
 0x11c   :  { %v498_v26 = vmul.f32 %v492_v24, %v984_v58  ;;  %v331_v28 = vmul.f32 %v965_v31, %v990_v2  ;;  %v405_v29 = vmul.f32 %v971_v36, %v995_v7  ;;  %v351_v30 = vmul.f32 %v967_v32, %v990_v2 }
 0x11d   :  { %v425_v33 = vmul.f32 %v975_v39, %v995_v7  ;;  %v371_v31 = vmul.f32 %v977_v43, %v990_v2  ;;  %v445_v36 = vmul.f32 %v442_v15, %v995_v7  ;;  %v479_v32 = vmul.f32 %v476_v11, %v992_v3  ;;  %v516_v39 = vpop.permute.xlu0 %515 }
 0x11e   :  { %v285_v13 = vpop.f32.mrb[4].mxu0  ;;  %v550_v38 = vpop.permute.xlu1 %549  ;;  %v518_v40 = vmul.f32 %v512_v27, %v984_v58  ;;  %v499_v41 = vmul.f32 %v496_v23, %v992_v3  ;;  %v552_v42 = vmul.f32 %v546_v34, %v988_v63  ;;  %v519_v45 = vmul.f32 %v516_v39, %v992_v3 }
 0x11f   :  { %v286_v16 = vadd.f32 %v285_v13, %v98_v10  ;;  %v657_v17 = vpop.f32.mrb[5].mxu0  ;;  %408 = vrot.lane.b32.xlu1 %v404_v12, %s852_s3  ;;  %354 = vrot.lane.b32.xlu0 %v350_v14, %s826_s28  ;;  %v553_v48 = vmul.f32 %v550_v38, %v997_v8  ;;  %v318_v4 = vmul.f32 %v969_v35, %v982_v57 }
 0x120   :  { %v288_v18 = vpop.f32.mrb[6].mxu0  ;;  %v319_v35 = vmul.f32 %v973_v37, %v990_v2 }
 0x121   :  { %296 = vst.msk [vmem:[#allocation2 + $0x20] sm:$0xff] %vm161_vm0, %v286_v16  ;;  %v289_v19 = vadd.f32 %v288_v18, %v98_v10  ;;  %v658_v21 = vpop.f32.mrb[7].mxu0  ;;  %v566_v44 = vpop.permute.xlu0 %565 }
 0x122   :  { %v570_v43 = vpop.permute.xlu1 %569  ;;  %v572_v46 = vmul.f32 %v566_v44, %v988_v63 }
 0x123   :  { %301 = vst.msk [vmem:[#allocation2 + $0x48] sm:$0xff] %vm161_vm0, %v289_v19  ;;  %428 = vrot.lane.b32.xlu1 %v424_v20, %s826_s28  ;;  %374 = vrot.lane.b32.xlu0 %v370_v22, %s853_s10  ;;  %v573_v50 = vmul.f32 %v570_v43, %v997_v8 }
 0x125   :  { %v590_v51 = vpop.permute.xlu0 %589 }
 0x126   :  { %v586_v47 = vpop.permute.xlu1 %585  ;;  %v593_v52 = vmul.f32 %v590_v51, %v997_v8 }
 0x127   :  { %448 = vrot.lane.b32.xlu1 %v444_v25, %s853_s10  ;;  %502 = vrot.lane.b32.xlu0 %v498_v26, %s826_s28  ;;  %v592_v49 = vmul.f32 %v586_v47, %v988_v63 }
 0x128   :  { %v304_v0 = vld [vmem:[#allocation2 + $0x20] sm:$0xff] }
 0x129   :  { %v460_v56 = vpop.permute.xlu0 %459  ;;  %v320_v5 = vadd.f32 %v318_v4, %v304_v0 }
 0x12a   :  { %v386_v53 = vpop.permute.xlu1 %385  ;;  %v305_v21 = vld [vmem:[#allocation2 + $0x48] sm:$0xff]  ;;  %v466_v23 = vmul.f32 %v460_v56, %v984_v58 }
 0x12b   :  { %336 = vrot.lane.b32.xlu1 %v331_v28, %s852_s3  ;;  %410 = vrot.lane.b32.xlu0 %v405_v29, %s852_s3  ;;  %v392_v14 = vmul.f32 %v386_v53, %v986_v62  ;;  %v321_v25 = vadd.f32 %v319_v35, %v305_v21 }
 0x12d   :  { %v538_v60 = vpop.permute.xlu0 %537 }
 0x12e   :  { %v390_v54 = vpop.permute.xlu1 %389 }
 0x12f   :  { %356 = vrot.lane.b32.xlu1 %v351_v30, %s826_s28  ;;  %430 = vrot.lane.b32.xlu0 %v425_v33, %s826_s28  ;;  %v393_v34 = vmul.f32 %v390_v54, %v995_v7  ;;  %v541_v54 = vmul.f32 %v538_v60, %v997_v8 }
 0x132   :  { %v464_v55 = vpop.permute.xlu1 %463 }
 0x133   :  { %376 = vrot.lane.b32.xlu1 %v371_v31, %s853_s10  ;;  %450 = vrot.lane.b32.xlu0 %v445_v36, %s853_s10  ;;  %v467_v44 = vmul.f32 %v464_v55, %v992_v3 }
 0x136   :  { %v534_v59 = vpop.permute.xlu1 %533 }
 0x137   :  { %484 = vrot.lane.b32.xlu1 %v479_v32, %s852_s3  ;;  %522 = vrot.lane.b32.xlu0 %v518_v40, %s853_s10  ;;  %v540_v58 = vmul.f32 %v534_v59, %v988_v63  ;;  %v647_v63 = vld [vmem:[%s1087_s4] ss:$0 sm:$0xff] }
 0x13b   :  { %504 = vrot.lane.b32.xlu1 %v499_v41, %s826_s28  ;;  %556 = vrot.lane.b32.xlu0 %v552_v42, %s852_s3 }
 0x13f   :  { %524 = vrot.lane.b32.xlu1 %v519_v45, %s853_s10  ;;  %576 = vrot.lane.b32.xlu0 %v572_v46, %s826_s28 }
 0x143   :  { %558 = vrot.lane.b32.xlu1 %v553_v48, %s852_s3  ;;  %596 = vrot.lane.b32.xlu0 %v592_v49, %s853_s10 }
 0x147   :  { %578 = vrot.lane.b32.xlu1 %v573_v50, %s826_s28 }
 0x14b   :  { %598 = vrot.lane.b32.xlu1 %v593_v52, %s853_s10 }
 0x18d   :  { %v483_v61 = vpop.permute.xlu1 %482  ;;  %v335_v1 = vpop.permute.xlu0 %334 }
 0x18e   :  { %v340_v10 = vadd.f32 %v335_v1, %v320_v5 }
 0x191   :  { %v409_v6 = vpop.permute.xlu1 %408  ;;  %v355_v9 = vpop.permute.xlu0 %354 }
 0x192   :  { %v360_v11 = vadd.f32 %v355_v9, %v340_v10 }
 0x195   :  { %v429_v12 = vpop.permute.xlu1 %428  ;;  %v375_v13 = vpop.permute.xlu0 %374 }
 0x196   :  { %v380_v15 = vadd.f32 %v375_v13, %v360_v11 }
 0x198   :  { %v394_v16 = vadd.f32 %v392_v14, %v380_v15 }
 0x199   :  { %v449_v17 = vpop.permute.xlu1 %448  ;;  %v503_v18 = vpop.permute.xlu0 %502 }
 0x19a   :  { %v414_v19 = vadd.f32 %v409_v6, %v394_v16 }
 0x19c   :  { %v434_v20 = vadd.f32 %v429_v12, %v414_v19 }
 0x19d   :  { %v337_v22 = vpop.permute.xlu1 %336  ;;  %v411_v57 = vpop.permute.xlu0 %410 }
 0x19e   :  { %v454_v24 = vadd.f32 %v449_v17, %v434_v20  ;;  %v341_v28 = vadd.f32 %v337_v22, %v321_v25 }
 0x1a0   :  { %v468_v26 = vadd.f32 %v466_v23, %v454_v24 }
 0x1a1   :  { %v357_v27 = vpop.permute.xlu1 %356  ;;  %v431_v62 = vpop.permute.xlu0 %430 }
 0x1a2   :  { %v361_v29 = vadd.f32 %v357_v27, %v341_v28  ;;  %v488_v30 = vadd.f32 %v483_v61, %v468_v26 }
 0x1a4   :  { %v508_v32 = vadd.f32 %v503_v18, %v488_v30 }
 0x1a5   :  { %v377_v33 = vpop.permute.xlu1 %376  ;;  %v451_v36 = vpop.permute.xlu0 %450 }
 0x1a6   :  { %v381_v31 = vadd.f32 %v377_v33, %v361_v29 }
 0x1a8   :  { %v395_v38 = vadd.f32 %v393_v34, %v381_v31 }
 0x1a9   :  { %v485_v40 = vpop.permute.xlu1 %484  ;;  %v523_v2 = vpop.permute.xlu0 %522 }
 0x1aa   :  { %v415_v37 = vadd.f32 %v411_v57, %v395_v38  ;;  %v528_v39 = vadd.f32 %v523_v2, %v508_v32 }
 0x1ac   :  { %v435_v41 = vadd.f32 %v431_v62, %v415_v37  ;;  %v542_v43 = vadd.f32 %v540_v58, %v528_v39 }
 0x1ad   :  { %v505_v42 = vpop.permute.xlu1 %504  ;;  %v557_v46 = vpop.permute.xlu0 %556 }
 0x1ae   :  { %v455_v45 = vadd.f32 %v451_v36, %v435_v41  ;;  %v562_v50 = vadd.f32 %v557_v46, %v542_v43 }
 0x1b0   :  { %v469_v47 = vadd.f32 %v467_v44, %v455_v45 }
 0x1b1   :  { %v525_v48 = vpop.permute.xlu1 %524  ;;  %v577_v49 = vpop.permute.xlu0 %576 }
 0x1b2   :  { %v489_v7 = vadd.f32 %v485_v40, %v469_v47  ;;  %v582_v52 = vadd.f32 %v577_v49, %v562_v50 }
 0x1b4   :  { %v509_v51 = vadd.f32 %v505_v42, %v489_v7 }
 0x1b5   :  { %v559_v53 = vpop.permute.xlu1 %558  ;;  %v597_v59 = vpop.permute.xlu0 %596 }
 0x1b6   :  { %v529_v56 = vadd.f32 %v525_v48, %v509_v51  ;;  %v602_v61 = vadd.f32 %v597_v59, %v582_v52 }
 0x1b8   :  { %v543_v3 = vadd.f32 %v541_v54, %v529_v56  ;;  %v611_v55 = vadd.f32 %v647_v63, %v602_v61 }
 0x1b9   :  { %v579_v0 = vpop.permute.xlu1 %578 }
 0x1ba   :  { %v563_v1 = vadd.f32 %v559_v53, %v543_v3  ;;  %613 = vst.msk [vmem:[#allocation9] sm:$0xff] %vm161_vm0, %v611_v55 }
 0x1bc   :  { %v583_v4 = vadd.f32 %v579_v0, %v563_v1 }
 0x1bd   :  { %v599_v5 = vpop.permute.xlu1 %598 }
 0x1be   :  { %v603_v6 = vadd.f32 %v599_v5, %v583_v4 }
 0x1c0   :  { %v612_v9 = vadd.f32 %v647_v63, %v603_v6 }
 0x1c2   :  { %614 = vst.msk [vmem:[#allocation9 + $0x8] sm:$0xff] %vm161_vm0, %v612_v9 }
 0x1c3   :  { %808 = shalt.err (!%p805_p0)
}
 0x1c4   :  { %s809_s16 = scalar_lea.hbm %s1088_s5, 256 }
 0x1c5   :  { %p810_p1 = scmp.ne.s32.totalorder %s1088_s5, %s809_s16  ;;  %p813_p2 = scmp.lt.u32.totalorder %s809_s16, %s1088_s5 }
 0x1c7   :  { %p815_p3 = pnand %p813_p2, %p810_p1 }
 0x1c9   :  { %818 = shalt.err (!%p815_p3)
}
 0x1ca   :  { %626 = dma.vmem_to_hbm [thread:$0]  %s621_s13, 256, %s1088_s5, [#allocation5], %s829_s1, %s829_s1, %s830_s17  }
 0x1cb   :  { %823 = dma.done.wait [#allocation5], 256  }
 0x1cc   :  { %824 = vsyncadd [#allocation5], 4294967040 }
 0x1cd   :  { %630 = vsyncpa [#allocation4], 1 }
 0x1ce   :  { %631 = vsyncpa [#allocation7], 1 }
 0x1cf   :  { %632 = vsyncpa [#allocation5], 1 }

</bundles_post_ra>
